<compile_context>
chip_gen: v7x
topology: tpu7x:2x2x1
jax: 0.10.0
libtpu: 0.0.40
codegen_flags: <defaults>
</compile_context>

<pallas_src>
import jax
import jax.numpy as jnp
from jax import lax
from jax.experimental import pallas as pl
from jax.experimental.pallas import tpu as pltpu


# a (.) b contracting the feature (last) axis of both == a @ b^T, without
# materializing any transpose.
_CONTRACT_FEATURES = (((1,), (1,)), ((), ()))


def _rescal_fused_kernel(er_ref, ec_ref, rel_ref, w_ref, b_ref, o_ref):
    """One grid step: gate the inputs, score one entity-row tile against all
    entities and all relations, and write the (tm*R, N) output slab."""
    # gate_nn: y = x @ W^T + b, feature-axis contraction (no transpose).
    e_rows = lax.dot_general(er_ref[...], w_ref[...], _CONTRACT_FEATURES,
                             preferred_element_type=jnp.float32) + b_ref[...]
    e_cols = lax.dot_general(ec_ref[...], w_ref[...], _CONTRACT_FEATURES,
                             preferred_element_type=jnp.float32) + b_ref[...]
    r_g = lax.dot_general(rel_ref[...], w_ref[...], _CONTRACT_FEATURES,
                          preferred_element_type=jnp.float32) + b_ref[...]

    tm, f = e_rows.shape
    nrel = r_g.shape[0]

    # scaled[i*R + r, :] = E_g[i, :] * R_g[r, :]   (row i of E_g @ diag(R_r))
    scaled = (e_rows[:, None, :] * r_g[None, :, :]).reshape(tm * nrel, f)

    # One batched MXU call covers every relation of this row tile:
    # (tm*R, F) contracted with (N, F) on F -> (tm*R, N) == scaled @ E_g^T.
    o_ref[...] = lax.dot_general(scaled, e_cols, _CONTRACT_FEATURES,
                                 preferred_element_type=jnp.float32)


def rescal_forward(entities, relations, w, b, *, row_tile=None):
    """RESCAL forward (diagonal to_matrix).

    entities: (N, F) float32; relations: (R, F) float32
    w: (F, F) PyTorch Linear weight; b: (F,) bias
    Returns scores with PyTorch layout (N, R, N).
    """
    n, f = entities.shape
    nrel, f_r = relations.shape
    assert f_r == f and w.shape == (f, f) and b.shape == (f,)

    if row_tile is None:
        # Largest row tile that keeps the per-step (tm*R, N) f32 output block
        # (double-buffered) comfortably inside the most constrained scoped-VMEM
        # budget (v5e 16 MiB default, v7x 64 MiB physical). At the toy sizes
        # this collapses to a single grid step.
        row_tile = n if n <= 256 else 256
    tm = int(row_tile)

    grid = (pl.cdiv(n, tm),)
    b_row = b.reshape(1, f)

    slab = pl.pallas_call(
        _rescal_fused_kernel,
        out_shape=jax.ShapeDtypeStruct((n * nrel, n), jnp.float32),
        grid=grid,
        in_specs=[
            pl.BlockSpec((tm, f), lambda i: (i, 0)),    # entity row tile (scored rows)
            pl.BlockSpec((n, f), lambda i: (0, 0)),     # full entities (column side), resident
            pl.BlockSpec((nrel, f), lambda i: (0, 0)),  # relations, resident
            pl.BlockSpec((f, f), lambda i: (0, 0)),     # gate_nn weight
            pl.BlockSpec((1, f), lambda i: (0, 0)),     # gate_nn bias
        ],
        out_specs=pl.BlockSpec((tm * nrel, n), lambda i: (i, 0)),
        compiler_params=pltpu.CompilerParams(
            # Row tiles (hence output slabs) are fully independent: shard
            # across TensorCores on v7x; neutral on single-TC v5e/v6e.
            dimension_semantics=("parallel",),
        ),
    )(entities, entities, relations, w, b_row)

    # Row-major metadata reshape (no transpose, no extra HBM pass):
    # slab[i * R + r, j] == scores[i, r, j].
    return slab.reshape(n, nrel, n)


# TODO(synk): 'outer_product' to_matrix variant not wired in (module default is
# 'diagonal'); it reduces to (E_g @ R_g[r]) outer-scored against E_g and fits
# the same fused structure.


if __name__ == "__main__":
    n_entity, n_relations, n_features = 16, 8, 32

    key = jax.random.PRNGKey(0)
    k_e, k_r, k_w, k_b = jax.random.split(key, 4)

    entities = jax.random.normal(k_e, (n_entity, n_features), dtype=jnp.float32)
    relations = jax.random.normal(k_r, (n_relations, n_features), dtype=jnp.float32)

    # Deterministic gate_nn params (PyTorch Linear default init: U(-1/sqrt(F), 1/sqrt(F)))
    bound = 1.0 / (n_features ** 0.5)
    w = jax.random.uniform(k_w, (n_features, n_features), jnp.float32, -bound, bound)
    b = jax.random.uniform(k_b, (n_features,), jnp.float32, -bound, bound)

    scores = rescal_forward(entities, relations, w, b)
    scores = jax.block_until_ready(scores)

    # Pure-JAX reference for correctness.
    e_g = entities @ w.T + b
    r_g = relations @ w.T + b
    ref = jnp.einsum("if,rf,jf->irj", e_g, r_g, e_g)

    assert scores.shape == (n_entity, n_relations, n_entity)
    assert jnp.allclose(scores, ref, atol=1e-4, rtol=1e-4), (
        float(jnp.max(jnp.abs(scores - ref)))
    )
    print("KERNEL_OK")
</pallas_src>

<mosaic_0001>
module attributes {stable_mosaic.version = 11 : i64} {
  func.func @_rescal_fused_kernel(%arg0: i32, %arg1: memref<16x32xf32, #tpu.memory_space<vmem>>, %arg2: memref<16x32xf32, #tpu.memory_space<vmem>>, %arg3: memref<8x32xf32, #tpu.memory_space<vmem>>, %arg4: memref<32x32xf32, #tpu.memory_space<vmem>>, %arg5: memref<1x32xf32, #tpu.memory_space<vmem>>, %arg6: memref<128x16xf32, #tpu.memory_space<vmem>>) attributes {dimension_semantics = [#tpu.dimension_semantics<parallel>], iteration_bounds = array<i64: 1>, scalar_prefetch = 0 : i64, scratch_operands = 0 : i64, tpu.core_type = #tpu.core_type<tc>, window_params = [{transform_indices = @transform_0, window_bounds = array<i64: 16, 32>}, {pipeline_mode = #tpu.pipeline_mode<synchronous>, transform_indices = @transform_1, window_bounds = array<i64: 16, 32>}, {pipeline_mode = #tpu.pipeline_mode<synchronous>, transform_indices = @transform_2, window_bounds = array<i64: 8, 32>}, {pipeline_mode = #tpu.pipeline_mode<synchronous>, transform_indices = @transform_3, window_bounds = array<i64: 32, 32>}, {pipeline_mode = #tpu.pipeline_mode<synchronous>, transform_indices = @transform_4, window_bounds = array<i64: 1, 32>}, {transform_indices = @transform_5, window_bounds = array<i64: 128, 16>}]} {
    %c0 = arith.constant 0 : index
    %c0_0 = arith.constant 0 : index
    %0 = vector.load %arg1[%c0, %c0_0] : memref<16x32xf32, #tpu.memory_space<vmem>>, vector<16x32xf32>
    %c0_1 = arith.constant 0 : index
    %c0_2 = arith.constant 0 : index
    %1 = vector.load %arg4[%c0_1, %c0_2] : memref<32x32xf32, #tpu.memory_space<vmem>>, vector<32x32xf32>
    %cst = arith.constant dense<0.000000e+00> : vector<16x32xf32>
    %2 = tpu.matmul %0, %1, %cst {dimension_numbers = #tpu.dot_dimension_numbers<[1], [1], [0], [0], [0, 0, 1, 0], [], []>} : vector<16x32xf32>, vector<32x32xf32>, vector<16x32xf32> -> vector<16x32xf32>
    %c0_3 = arith.constant 0 : index
    %c0_4 = arith.constant 0 : index
    %3 = vector.load %arg5[%c0_3, %c0_4] : memref<1x32xf32, #tpu.memory_space<vmem>>, vector<1x32xf32>
    %4 = vector.broadcast %3 : vector<1x32xf32> to vector<16x32xf32>
    %5 = arith.addf %2, %4 : vector<16x32xf32>
    %c0_5 = arith.constant 0 : index
    %c0_6 = arith.constant 0 : index
    %6 = vector.load %arg2[%c0_5, %c0_6] : memref<16x32xf32, #tpu.memory_space<vmem>>, vector<16x32xf32>
    %c0_7 = arith.constant 0 : index
    %c0_8 = arith.constant 0 : index
    %7 = vector.load %arg4[%c0_7, %c0_8] : memref<32x32xf32, #tpu.memory_space<vmem>>, vector<32x32xf32>
    %cst_9 = arith.constant dense<0.000000e+00> : vector<16x32xf32>
    %8 = tpu.matmul %6, %7, %cst_9 {dimension_numbers = #tpu.dot_dimension_numbers<[1], [1], [0], [0], [0, 0, 1, 0], [], []>} : vector<16x32xf32>, vector<32x32xf32>, vector<16x32xf32> -> vector<16x32xf32>
    %c0_10 = arith.constant 0 : index
    %c0_11 = arith.constant 0 : index
    %9 = vector.load %arg5[%c0_10, %c0_11] : memref<1x32xf32, #tpu.memory_space<vmem>>, vector<1x32xf32>
    %10 = vector.broadcast %9 : vector<1x32xf32> to vector<16x32xf32>
    %11 = arith.addf %8, %10 : vector<16x32xf32>
    %c0_12 = arith.constant 0 : index
    %c0_13 = arith.constant 0 : index
    %12 = vector.load %arg3[%c0_12, %c0_13] : memref<8x32xf32, #tpu.memory_space<vmem>>, vector<8x32xf32>
    %c0_14 = arith.constant 0 : index
    %c0_15 = arith.constant 0 : index
    %13 = vector.load %arg4[%c0_14, %c0_15] : memref<32x32xf32, #tpu.memory_space<vmem>>, vector<32x32xf32>
    %cst_16 = arith.constant dense<0.000000e+00> : vector<8x32xf32>
    %14 = tpu.matmul %12, %13, %cst_16 {dimension_numbers = #tpu.dot_dimension_numbers<[1], [1], [0], [0], [0, 0, 1, 0], [], []>} : vector<8x32xf32>, vector<32x32xf32>, vector<8x32xf32> -> vector<8x32xf32>
    %c0_17 = arith.constant 0 : index
    %c0_18 = arith.constant 0 : index
    %15 = vector.load %arg5[%c0_17, %c0_18] : memref<1x32xf32, #tpu.memory_space<vmem>>, vector<1x32xf32>
    %16 = vector.broadcast %15 : vector<1x32xf32> to vector<8x32xf32>
    %17 = arith.addf %14, %16 : vector<8x32xf32>
    %18 = vector.shape_cast %5 : vector<16x32xf32> to vector<16x1x32xf32>
    %19 = vector.shape_cast %17 : vector<8x32xf32> to vector<1x8x32xf32>
    %20 = vector.broadcast %18 : vector<16x1x32xf32> to vector<16x8x32xf32>
    %21 = vector.broadcast %19 : vector<1x8x32xf32> to vector<16x8x32xf32>
    %22 = arith.mulf %20, %21 : vector<16x8x32xf32>
    %23 = vector.shape_cast %22 : vector<16x8x32xf32> to vector<128x32xf32>
    %cst_19 = arith.constant dense<0.000000e+00> : vector<128x16xf32>
    %24 = tpu.matmul %23, %11, %cst_19 {dimension_numbers = #tpu.dot_dimension_numbers<[1], [1], [0], [0], [0, 0, 1, 0], [], []>} : vector<128x32xf32>, vector<16x32xf32>, vector<128x16xf32> -> vector<128x16xf32>
    %c0_20 = arith.constant 0 : index
    %c0_21 = arith.constant 0 : index
    %25 = vector.load %arg6[%c0_20, %c0_21] : memref<128x16xf32, #tpu.memory_space<vmem>>, vector<128x16xf32>
    tpu.vector_store %arg6[%c0_20, %c0_21], %24 {strides = array<i32>} : memref<128x16xf32, #tpu.memory_space<vmem>>, vector<128x16xf32>,
    return
  }
  func.func @transform_0(%arg0: i32) -> (i32, i32) {
    %c0_i32 = arith.constant 0 : i32
    %c0_i32_0 = arith.constant 0 : i32
    return %arg0, %c0_i32 : i32, i32
  }
  func.func @transform_1(%arg0: i32) -> (i32, i32) {
    %c0_i32 = arith.constant 0 : i32
    %c0_i32_0 = arith.constant 0 : i32
    %c0_i32_1 = arith.constant 0 : i32
    return %c0_i32, %c0_i32_0 : i32, i32
  }
  func.func @transform_2(%arg0: i32) -> (i32, i32) {
    %c0_i32 = arith.constant 0 : i32
    %c0_i32_0 = arith.constant 0 : i32
    %c0_i32_1 = arith.constant 0 : i32
    return %c0_i32, %c0_i32_0 : i32, i32
  }
  func.func @transform_3(%arg0: i32) -> (i32, i32) {
    %c0_i32 = arith.constant 0 : i32
    %c0_i32_0 = arith.constant 0 : i32
    %c0_i32_1 = arith.constant 0 : i32
    return %c0_i32, %c0_i32_0 : i32, i32
  }
  func.func @transform_4(%arg0: i32) -> (i32, i32) {
    %c0_i32 = arith.constant 0 : i32
    %c0_i32_0 = arith.constant 0 : i32
    %c0_i32_1 = arith.constant 0 : i32
    return %c0_i32, %c0_i32_0 : i32, i32
  }
  func.func @transform_5(%arg0: i32) -> (i32, i32) {
    %c0_i32 = arith.constant 0 : i32
    %c0_i32_0 = arith.constant 0 : i32
    return %arg0, %c0_i32 : i32, i32
  }
}

</mosaic_0001>

<bundles_post_ra>
// kernel: tpu_custom_call.1
= control target key start
LH: loop header
LB: loop body
LE: loop exit
PB: predicated region body
PF: predicated region fallthrough
CT: control target
= control target key end

     0   :  { %10 = vsyncpa [#allocation3], 0  ;;  %s1265_s0 = inlined_call_operand.hbm [shape: f32[16,32], index: 0, kind: input, shape index: {}]   ;;  %s1266_s1 = inlined_call_operand.hbm [shape: f32[16,32], index: 1, kind: input, shape index: {}]   ;;  %s1267_s2 = inlined_call_operand.hbm [shape: f32[8,32], index: 2, kind: input, shape index: {}]   ;;  %s1268_s3 = inlined_call_operand.hbm [shape: f32[32,32], index: 3, kind: input, shape index: {}]   ;;  %s1269_s4 = inlined_call_operand.vmem [shape: f32[1,32], index: 4, kind: input, shape index: {}]   ;;  %s1270_s5 = inlined_call_operand.vmem [shape: f32[128,16], index: 5, kind: output, shape index: {}]  }
   0x1   :  { %11 = vsyncpa [#allocation5], 0 }
   0x2   :  { %12 = vsyncpa [#allocation8], 0  ;;  %s1032_s18 = smov [#allocation4]   ;;  %s1033_s20 = smov [#allocation2]  }
   0x3   :  { %s30_s19 = sshll.u32 %s1032_s18, 4  ;;  %s18_s21 = sshll.u32 %s1033_s20, 4  ;;  %s31_s19 = int_to_ptr.vmem [resolvable:$true] %s30_s19  ;;  %s1072_s21 = int_to_ptr.vmem [resolvable:$true] %s18_s21 }
   0x4   :  { %s938_s24 = scalar_lea.hbm %s1266_s1, 256 }
   0x5   :  { %p939_p0 = scmp.ne.s32.totalorder %s1266_s1, %s938_s24  ;;  %p942_p1 = scmp.lt.u32.totalorder %s938_s24, %s1266_s1 }
   0x7   :  { %p944_p2 = pnand %p942_p1, %p939_p0 }
   0x9   :  { %947 = shalt.err (!%p944_p2)
}
   0xa   :  { %s948_s29 = scalar_lea.vmem %s31_s19, 256  ;;  %p953_p4 = scmp.lt.s32.totalorder %s31_s19, %s31_s19 }
   0xb   :  { %p949_p3 = scmp.ne.s32.totalorder %s31_s19, %s948_s29  ;;  %p954_p5 = scmp.lt.s32.totalorder %s948_s29, %s948_s29 }
   0xd   :  { %p955_p6 = por %p954_p5, %p953_p4 }
   0xf   :  { %p956_p7 = pnand %p955_p6, %p949_p3 }
  0x11   :  { %959 = shalt.err (!%p956_p7)
}
  0x12   :  { %s1034_s30 = smov 128   ;;  %s1035_s6 = smov 8  }
  0x13   :  { %36 = dma.hbm_to_vmem [thread:$0]  %s1266_s1, 256, %s31_s19, [#allocation5], %s1034_s30, %s1034_s30, %s1035_s6  }
  0x14   :  { %s960_s11 = scalar_lea.hbm %s1265_s0, 256 }
  0x15   :  { %p961_p8 = scmp.ne.s32.totalorder %s1265_s0, %s960_s11  ;;  %p964_p9 = scmp.lt.u32.totalorder %s960_s11, %s1265_s0 }
  0x17   :  { %p966_p10 = pnand %p964_p9, %p961_p8 }
  0x19   :  { %969 = shalt.err (!%p966_p10)
}
  0x1a   :  { %s970_s16 = scalar_lea.vmem %s1072_s21, 256  ;;  %p975_p12 = scmp.lt.s32.totalorder %s1072_s21, %s1072_s21 }
  0x1b   :  { %p971_p11 = scmp.ne.s32.totalorder %s1072_s21, %s970_s16  ;;  %p976_p13 = scmp.lt.s32.totalorder %s970_s16, %s970_s16 }
  0x1d   :  { %p977_p0 = por %p976_p13, %p975_p12 }
  0x1f   :  { %p978_p1 = pnand %p977_p0, %p971_p11 }
  0x21   :  { %981 = shalt.err (!%p978_p1)
}
  0x22   :  { %24 = dma.hbm_to_vmem [thread:$0]  %s1265_s0, 256, %s1072_s21, [#allocation3], %s1034_s30, %s1034_s30, %s1035_s6  }
  0x23   :  { %s1036_s18 = smov [#allocation6]   ;;  %s1037_s20 = smov [#allocation7]  }
  0x24   :  { %s43_s19 = sshll.u32 %s1036_s18, 4  ;;  %s52_s22 = sshll.u32 %s1037_s20, 4  ;;  %s44_s19 = int_to_ptr.vmem [resolvable:$true] %s43_s19  ;;  %s1109_s22 = int_to_ptr.vmem [resolvable:$true] %s52_s22 }
  0x25   :  { %s982_s25 = scalar_lea.hbm %s1267_s2, 128 }
  0x26   :  { %p983_p2 = scmp.ne.s32.totalorder %s1267_s2, %s982_s25  ;;  %p986_p3 = scmp.lt.u32.totalorder %s982_s25, %s1267_s2 }
  0x28   :  { %p988_p4 = pnand %p986_p3, %p983_p2 }
  0x2a   :  { %991 = shalt.err (!%p988_p4)
}
  0x2b   :  { %s992_s0 = scalar_lea.vmem %s44_s19, 128  ;;  %p997_p6 = scmp.lt.s32.totalorder %s44_s19, %s44_s19 }
  0x2c   :  { %p993_p5 = scmp.ne.s32.totalorder %s44_s19, %s992_s0  ;;  %p998_p7 = scmp.lt.s32.totalorder %s992_s0, %s992_s0 }
  0x2e   :  { %p999_p8 = por %p998_p7, %p997_p6 }
  0x30   :  { %p1000_p9 = pnand %p999_p8, %p993_p5 }
  0x32   :  { %1003 = shalt.err (!%p1000_p9)
}
  0x33   :  { %46 = dma.hbm_to_vmem [thread:$0]  %s1267_s2, 128, %s44_s19, [#allocation5]  }
  0x34   :  { %s1004_s10 = scalar_lea.hbm %s1268_s3, 512 }
  0x35   :  { %p1005_p10 = scmp.ne.s32.totalorder %s1268_s3, %s1004_s10  ;;  %p1008_p11 = scmp.lt.u32.totalorder %s1004_s10, %s1268_s3 }
  0x37   :  { %p1010_p12 = pnand %p1008_p11, %p1005_p10 }
  0x39   :  { %1013 = shalt.err (!%p1010_p12)
}
  0x3a   :  { %s1014_s15 = scalar_lea.vmem %s1109_s22, 512  ;;  %p1019_p0 = scmp.lt.s32.totalorder %s1109_s22, %s1109_s22 }
  0x3b   :  { %p1015_p13 = scmp.ne.s32.totalorder %s1109_s22, %s1014_s15  ;;  %p1020_p1 = scmp.lt.s32.totalorder %s1014_s15, %s1014_s15 }
  0x3d   :  { %p1021_p2 = por %p1020_p1, %p1019_p0 }
  0x3f   :  { %p1022_p3 = pnand %p1021_p2, %p1015_p13 }
  0x41   :  { %1025 = shalt.err (!%p1022_p3)
}
  0x42   :  { %58 = dma.hbm_to_vmem [thread:$0]  %s1268_s3, 512, %s1109_s22, [#allocation8], %s1034_s30, %s1034_s30, %s1035_s6  }
  0x43   :  { %1026 = dma.done.wait [#allocation3], 256  }
  0x44   :  { %1027 = vsyncadd [#allocation3], 4294967040 }
  0x45   :  { %1028 = dma.done.wait [#allocation5], 384  }
  0x46   :  { %1029 = vsyncadd [#allocation5], 4294966912 }
  0x47   :  { %1030 = dma.done.wait [#allocation8], 512  }
  0x48   :  { %1031 = vsyncadd [#allocation8], 4294966784  ;;  %vm86_vm0 = vcmask 261120   ;;  %v75_v1 = vld [vmem:[#allocation7] sm:$0xff]  ;;  %v76_v2 = vld [vmem:[#allocation7 + $0x8] sm:$0xff]  ;;  %v1038_v9 = vmov 0.0|0.0   ;;  %v343_v16 = vlaneseq }
  0x49   :  { %vm1145_vm1 = vmpackc.low %vm86_vm0, %vm86_vm0  ;;  %v77_v3 = vld [vmem:[#allocation7 + $0x10] sm:$0xff]  ;;  %v888_v4 = vpack.c.bf16 %v76_v2, %v75_v1  ;;  %v78_v5 = vld [vmem:[#allocation7 + $0x18] sm:$0xff]  ;;  %vm1039_vm2 = vmmov 0   ;;  %v1040_v12 = vmov 0.0   ;;  %v1041_v14 = vmov 1966171168  }
  0x4a   :  { %v73_v6 = vld [vmem:[#allocation2] sm:$0xff]  ;;  %v894_v7 = vpack.c.bf16 %v78_v5, %v77_v3  ;;  %v180_v8 = vld [vmem:[#allocation4] sm:$0xff]  ;;  %v74_v10 = vld [vmem:[#allocation2 + $0x8] sm:$0xff]  ;;  %v341_v15 = vunpack.c.l.s4 %v1041_v14  ;;  %v344_v18 = vshrl.u32 %v343_v16, 7  ;;  %vm732_vm3 = vcmask 130048  }
  0x4b   :  { %835 = vmatprep.mubr.msk.f32.mxu0 %vm86_vm0, %v73_v6  ;;  %890 = vmatprep.subr.msk.bf16.mxu0 %vm1145_vm1, %v888_v4  ;;  %v181_v11 = vld [vmem:[#allocation4 + $0x8] sm:$0xff]  ;;  %v263_v13 = vld [vmem:[#allocation6] sm:$0xff] }
  0x4c   :  { %902 = vmatprep.subr.msk.bf16.mxu1 %vm1145_vm1, %v888_v4  ;;  %893 = vmatpush3.bf16.xpose.msk.msra.mxu0 %vm1145_vm1, %v888_v4  ;;  %v342_v17 = vunpack.c.0.s8 %v341_v15  ;;  %v756_v19 = vld [vmem:[%s1269_s4] ss:$0 sm:$0xff]  ;;  %v439_v47 = vsub.s32 0, %v344_v18 }
  0x4d   :  { %905 = vmatpush3.bf16.xpose.msk.msra.mxu1 %vm1145_vm1, %v888_v4  ;;  %896 = vmatprep.subr.msk.bf16.mxu0 %vm1145_vm1, %v894_v7 }
  0x4e   :  { %908 = vmatprep.subr.msk.bf16.mxu1 %vm1145_vm1, %v894_v7  ;;  %846 = vmatprep.mubr.msk.f32.mxu1 %vm86_vm0, %v180_v8  ;;  %v345_v20 = vsub.s32 %v342_v17, %v344_v18 }
  0x54   :  { %899 = vmatpush3.bf16.xpose.msk.msra.mxu0 %vm1145_vm1, %v894_v7 }
  0x55   :  { %911 = vmatpush3.bf16.xpose.msk.msra.mxu1 %vm1145_vm1, %v894_v7  ;;  %912 = vmatprep.subr.bf16.mxu0 %v1038_v9 }
  0x5b   :  { %836 = vmatmul.mubr.msk.f32.vlgmr.msra.gmra.mrb[0].mxu0 %vm86_vm0, %v74_v10 }
  0x5c   :  { %847 = vmatmul.mubr.msk.f32.vlgmr.msra.gmra.mrb[0].mxu1 %vm86_vm0, %v181_v11  ;;  %915 = vmatpush3.bf16.xpose.msk.msra.mxu0 %vm1145_vm1, %v888_v4 }
  0x5d   :  { %857 = vmatprep.mubr.msk.f32.mxu0 %vm1039_vm2, %v1040_v12  ;;  %916 = vmatprep.subr.bf16.mxu0 %v1038_v9 }
  0x64   :  { %919 = vmatpush3.bf16.xpose.msk.msra.mxu0 %vm1145_vm1, %v894_v7 }
  0x6b   :  { %858 = vmatmul.mubr.msk.f32.vlgmr.msra.gmra.mrb[2].mxu0 %vm86_vm0, %v263_v13 }
 0x12e   :  { %v837_v21 = vpop.f32.mrb[0].mxu0 }
 0x12f   :  { %v848_v22 = vpop.f32.mrb[0].mxu1  ;;  %v177_v23 = vadd.f32 %v837_v21, %v756_v19  ;;  %v171_v24 = vpop.f32.mrb[1].mxu0 }
 0x130   :  { %v260_v25 = vadd.f32 %v848_v22, %v756_v19  ;;  %v254_v26 = vpop.f32.mrb[1].mxu1  ;;  %v172_v27 = vadd.f32 %v756_v19, %v171_v24 }
 0x131   :  { %v255_v28 = vadd.f32 %v756_v19, %v254_v26  ;;  %v388_v29 = vcombine.high %v177_v23, %v177_v23  ;;  %v395_v30 = vrot.slane %v177_v23, %v345_v20 }
 0x132   :  { %v339_v31 = vcombine.high %v172_v27, %v172_v27  ;;  %v346_v32 = vrot.slane %v172_v27, %v345_v20 }
 0x133   :  { %v920_v33 = vpack.c.bf16 %v260_v25, %v255_v28  ;;  %v402_v34 = vrot.slane %v388_v29, %v345_v20  ;;  %v403_v35 = vcombine.high %v395_v30, %v395_v30  ;;  %v411_v39 = vrot.slane %v395_v30, %v345_v20 }
 0x134   :  { %v353_v36 = vrot.slane %v339_v31, %v345_v20  ;;  %v354_v37 = vcombine.high %v346_v32, %v346_v32  ;;  %v362_v41 = vrot.slane %v346_v32, %v345_v20 }
 0x135   :  { %922 = vmatprep.subr.msk.bf16.mxu0 %vm1145_vm1, %v920_v33  ;;  %926 = vmatprep.subr.msk.bf16.mxu1 %vm1145_vm1, %v920_v33  ;;  %v404_v38 = vcombine.high %v402_v34, %v402_v34  ;;  %v425_v42 = vrot.slane %v403_v35, %v345_v20  ;;  %v418_v45 = vrot.slane %v402_v34, %v345_v20 }
 0x136   :  { %925 = vmatpush3.bf16.xpose.msk.msra.mxu0 %vm1145_vm1, %v920_v33  ;;  %v355_v40 = vcombine.high %v353_v36, %v353_v36  ;;  %927 = vmatpush3.bf16.xpose.msk.msra.mxu1 %vm1145_vm1, %v920_v33  ;;  %v369_v43 = vrot.slane %v353_v36, %v345_v20  ;;  %v376_v44 = vrot.slane %v354_v37, %v345_v20 }
 0x137   :  { %v432_v46 = vrot.slane %v404_v38, %v345_v20  ;;  %v433_v49 = vcombine.high %v411_v39, %v411_v39  ;;  %v384_v50 = vcombine.high %v362_v41, %v362_v41  ;;  %v435_v51 = vcombine.high %v425_v42, %v425_v42 }
 0x138   :  { %v383_v48 = vrot.slane %v355_v40, %v345_v20  ;;  %v385_v52 = vcombine.high %v369_v43, %v369_v43  ;;  %v386_v53 = vcombine.high %v376_v44, %v376_v44  ;;  %v434_v54 = vcombine.high %v418_v45, %v418_v45 }
 0x139   :  { %v436_v55 = vcombine.high %v432_v46, %v432_v46  ;;  %v472_v56 = vrot.slane %v411_v39, %v439_v47  ;;  %v476_v58 = vrot.slane %v425_v42, %v439_v47  ;;  %v480_v59 = vrot.slane %v433_v49, %v439_v47 }
 0x13a   :  { %v387_v57 = vcombine.high %v383_v48, %v383_v48  ;;  %v488_v60 = vrot.slane %v418_v45, %v439_v47  ;;  %v440_v61 = vrot.slane %v362_v41, %v439_v47  ;;  %v444_v62 = vrot.slane %v376_v44, %v439_v47 }
 0x13b   :  { %v448_v63 = vrot.slane %v384_v50, %v439_v47  ;;  %v456_v0 = vrot.slane %v369_v43, %v439_v47  ;;  %v460_v1 = vrot.slane %v383_v48, %v439_v47  ;;  %v464_v5 = vrot.slane %v385_v52, %v439_v47 }
 0x13c   :  { %v452_v6 = vrot.slane %v386_v53, %v439_v47  ;;  %v484_v7 = vrot.slane %v435_v51, %v439_v47  ;;  %v468_v8 = vrot.slane %v387_v57, %v439_v47  ;;  %v492_v9 = vrot.slane %v432_v46, %v439_v47 }
 0x13d   :  { %v496_v10 = vrot.slane %v434_v54, %v439_v47  ;;  %v500_v11 = vrot.slane %v436_v55, %v439_v47 }
 0x13e   :  { %v333_v2 = vpop.f32.mrb[2].mxu0 }
 0x13f   :  { %v334_v3 = vadd.f32 %v756_v19, %v333_v2  ;;  %v859_v4 = vpop.f32.mrb[3].mxu0 }
 0x141   :  { %v517_v12 = vmul.f32 %v440_v61, %v334_v3  ;;  %v521_v13 = vmul.f32 %v456_v0, %v334_v3  ;;  %v518_v14 = vmul.f32 %v444_v62, %v334_v3  ;;  %v522_v15 = vmul.f32 %v460_v1, %v334_v3 }
 0x142   :  { %v519_v16 = vmul.f32 %v448_v63, %v334_v3  ;;  %v523_v17 = vmul.f32 %v464_v5, %v334_v3  ;;  %v520_v18 = vmul.f32 %v452_v6, %v334_v3  ;;  %v524_v20 = vmul.f32 %v468_v8, %v334_v3 }
 0x143   :  { %864 = vmatprep.mubr.msk.f32.mxu0 %vm86_vm0, %v517_v12  ;;  %870 = vmatprep.mubr.msk.f32.mxu1 %vm86_vm0, %v521_v13  ;;  %v525_v19 = vmul.f32 %v472_v56, %v334_v3  ;;  %v526_v21 = vmul.f32 %v476_v58, %v334_v3  ;;  %v527_v22 = vmul.f32 %v480_v59, %v334_v3 }
 0x144   :  { %865 = vmatmul.mubr.msk.f32.vlgmr.msra.gmra.mrb[4].mxu0 %vm86_vm0, %v518_v14  ;;  %871 = vmatmul.mubr.msk.f32.vlgmr.msra.gmra.mrb[2].mxu1 %vm86_vm0, %v522_v15  ;;  %v528_v23 = vmul.f32 %v484_v7, %v334_v3  ;;  %v529_v24 = vmul.f32 %v488_v60, %v334_v3  ;;  %v530_v25 = vmul.f32 %v492_v9, %v334_v3 }
 0x145   :  { %867 = vmatprep.mubr.msk.f32.mxu0 %vm86_vm0, %v519_v16  ;;  %873 = vmatprep.mubr.msk.f32.mxu1 %vm86_vm0, %v523_v17  ;;  %v531_v26 = vmul.f32 %v496_v10, %v334_v3  ;;  %v532_v27 = vmul.f32 %v500_v11, %v334_v3 }
 0x148   :  { %868 = vmatmul.mubr.msk.f32.gmra.mrb[6].mxu0 %vm86_vm0, %v520_v18  ;;  %874 = vmatmul.mubr.msk.f32.gmra.mrb[4].mxu1 %vm86_vm0, %v524_v20 }
 0x149   :  { %876 = vmatprep.mubr.msk.f32.mxu1 %vm86_vm0, %v525_v19 }
 0x14c   :  { %877 = vmatmul.mubr.msk.f32.gmra.mrb[6].mxu1 %vm86_vm0, %v526_v21 }
 0x14d   :  { %879 = vmatprep.mubr.msk.f32.mxu1 %vm86_vm0, %v527_v22 }
 0x150   :  { %880 = vmatmul.mubr.msk.f32.gmra.mrb[8].mxu1 %vm86_vm0, %v528_v23 }
 0x151   :  { %882 = vmatprep.mubr.msk.f32.mxu1 %vm86_vm0, %v529_v24 }
 0x154   :  { %883 = vmatmul.mubr.msk.f32.gmra.mrb[10].mxu1 %vm86_vm0, %v530_v25 }
 0x155   :  { %885 = vmatprep.mubr.msk.f32.mxu1 %vm86_vm0, %v531_v26 }
 0x158   :  { %886 = vmatmul.mubr.msk.f32.gmra.mrb[12].mxu1 %vm86_vm0, %v532_v27 }
 0x217   :  { %v866_v28 = vpop.f32.mrb[4].mxu0  ;;  %v872_v29 = vpop.f32.mrb[2].mxu1 }
 0x218   :  { %734 = vst.msk [vmem:[%s1270_s5 + $0x8] sm:$0xff] %vm732_vm3, %v866_v28  ;;  %738 = vst.msk [vmem:[%s1270_s5 + $0x28] sm:$0xff] %vm732_vm3, %v872_v29  ;;  %v653_v30 = vpop.f32.mrb[5].mxu0  ;;  %v673_v31 = vpop.f32.mrb[3].mxu1 }
 0x219   :  { %733 = vst.msk [vmem:[%s1270_s5] sm:$0xff] %vm732_vm3, %v653_v30  ;;  %737 = vst.msk [vmem:[%s1270_s5 + $0x20] sm:$0xff] %vm732_vm3, %v673_v31 }
 0x21b   :  { %v869_v32 = vpop.f32.mrb[6].mxu0  ;;  %v875_v33 = vpop.f32.mrb[4].mxu1 }
 0x21c   :  { %736 = vst.msk [vmem:[%s1270_s5 + $0x18] sm:$0xff] %vm732_vm3, %v869_v32  ;;  %740 = vst.msk [vmem:[%s1270_s5 + $0x38] sm:$0xff] %vm732_vm3, %v875_v33  ;;  %v663_v34 = vpop.f32.mrb[7].mxu0  ;;  %v683_v35 = vpop.f32.mrb[5].mxu1 }
 0x21d   :  { %735 = vst.msk [vmem:[%s1270_s5 + $0x10] sm:$0xff] %vm732_vm3, %v663_v34  ;;  %739 = vst.msk [vmem:[%s1270_s5 + $0x30] sm:$0xff] %vm732_vm3, %v683_v35 }
 0x21f   :  { %v878_v36 = vpop.f32.mrb[6].mxu1 }
 0x220   :  { %742 = vst.msk [vmem:[%s1270_s5 + $0x48] sm:$0xff] %vm732_vm3, %v878_v36  ;;  %v693_v37 = vpop.f32.mrb[7].mxu1 }
 0x221   :  { %741 = vst.msk [vmem:[%s1270_s5 + $0x40] sm:$0xff] %vm732_vm3, %v693_v37 }
 0x223   :  { %v881_v38 = vpop.f32.mrb[8].mxu1 }
 0x224   :  { %744 = vst.msk [vmem:[%s1270_s5 + $0x58] sm:$0xff] %vm732_vm3, %v881_v38  ;;  %v703_v39 = vpop.f32.mrb[9].mxu1 }
 0x225   :  { %743 = vst.msk [vmem:[%s1270_s5 + $0x50] sm:$0xff] %vm732_vm3, %v703_v39 }
 0x227   :  { %v884_v40 = vpop.f32.mrb[10].mxu1 }
 0x228   :  { %746 = vst.msk [vmem:[%s1270_s5 + $0x68] sm:$0xff] %vm732_vm3, %v884_v40  ;;  %v713_v41 = vpop.f32.mrb[11].mxu1 }
 0x229   :  { %745 = vst.msk [vmem:[%s1270_s5 + $0x60] sm:$0xff] %vm732_vm3, %v713_v41 }
 0x22b   :  { %v887_v42 = vpop.f32.mrb[12].mxu1 }
 0x22c   :  { %748 = vst.msk [vmem:[%s1270_s5 + $0x78] sm:$0xff] %vm732_vm3, %v887_v42  ;;  %v723_v43 = vpop.f32.mrb[13].mxu1 }
 0x22d   :  { %747 = vst.msk [vmem:[%s1270_s5 + $0x70] sm:$0xff] %vm732_vm3, %v723_v43 }
 0x22e   :  { %753 = vsyncpa [#allocation3], 1 }
 0x22f   :  { %754 = vsyncpa [#allocation5], 1 }
 0x230   :  { %755 = vsyncpa [#allocation8], 1 }

</bundles_post_ra>
